<compile_context>
chip_gen: v7x
topology: tpu7x:2x2x1
jax: 0.10.0
libtpu: 0.0.40
codegen_flags: <defaults>
</compile_context>

<pallas_src>
import functools

import jax
import jax.numpy as jnp
from jax.experimental import pallas as pl
from jax.experimental.pallas import tpu as pltpu


def _rcnn_kernel(L, R, H,
                 x_ref, w_in_ref, b_gates_ref,
                 whh_f_ref, whh_b_ref, wfc_f_ref, wfc_b_ref,
                 b_fc_ref, wcls_ref, bcls_ref,
                 out_ref, proj_s, z_s):
    """x_ref: [L, TB, H] bf16 (time-major).  out_ref: [TB, NL_PAD] f32."""
    G = 4 * R                      # gate width per direction
    x = x_ref[...]                 # bf16
    TB = x.shape[1]

    # ---- One big lane-dense MXU matmul for all time-parallel work -------------
    #   columns [0:G]      -> forward-direction input gates
    #   columns [G:2G]     -> backward-direction input gates
    #   columns [2G:2G+H]  -> fc_cat contribution of x (the "sequence_output" part)
    xproj = jax.lax.dot_general(
        x, w_in_ref[...],
        dimension_numbers=(((2,), (0,)), ((), ())),
        preferred_element_type=jnp.float32)                  # [L, TB, 2G+H] f32

    proj_s[...] = xproj[:, :, :2 * G] + b_gates_ref[...]     # gate pre-acts (+biases)
    z_s[...] = xproj[:, :, 2 * G:]                           # fc_cat x-term

    whh_f = whh_f_ref[...]         # [R, G] bf16
    whh_b = whh_b_ref[...]
    wfc_f = wfc_f_ref[...]         # [R, H] bf16
    wfc_b = wfc_b_ref[...]

    def lstm_cell(gates, c_prev):  # gates: [TB, G] f32 ; PyTorch order i, f, g, o
        i = jax.nn.sigmoid(gates[:, 0 * R:1 * R])
        f = jax.nn.sigmoid(gates[:, 1 * R:2 * R])
        g = jnp.tanh(gates[:, 2 * R:3 * R])
        o = jax.nn.sigmoid(gates[:, 3 * R:4 * R])
        c = f * c_prev + i * g
        h = o * jnp.tanh(c)
        return h, c

    h0 = jnp.zeros((TB, R), jnp.float32)
    c0 = jnp.zeros((TB, R), jnp.float32)

    # ---- Forward LSTM: accumulate its fc_cat contribution into z_s ------------
    def fwd_body(t, carry):
        h, c = carry
        gates = proj_s[t][:, :G] + jnp.dot(
            h.astype(jnp.bfloat16), whh_f, preferred_element_type=jnp.float32)
        h, c = lstm_cell(gates, c)
        z_s[t] = z_s[t] + jnp.dot(
            h.astype(jnp.bfloat16), wfc_f, preferred_element_type=jnp.float32)
        return h, c

    jax.lax.fori_loop(0, L, fwd_body, (h0, c0))

    # ---- Backward LSTM: fuse the max-over-time pool as a rolling max ----------
    def bwd_body(s, carry):
        h, c, zmax = carry
        t = L - 1 - s
        gates = proj_s[t][:, G:] + jnp.dot(
            h.astype(jnp.bfloat16), whh_b, preferred_element_type=jnp.float32)
        h, c = lstm_cell(gates, c)
        z = z_s[t] + jnp.dot(
            h.astype(jnp.bfloat16), wfc_b, preferred_element_type=jnp.float32)
        zmax = jnp.maximum(zmax, z)
        return h, c, zmax

    zmax0 = jnp.full((TB, H), -jnp.inf, jnp.float32)
    _, _, zmax = jax.lax.fori_loop(0, L, bwd_body, (h0, c0, zmax0))

    # tanh is monotone and the fc bias is time-invariant, so
    #   max_t tanh(z_t + b) == tanh(max_t z_t + b)  -> bias + tanh applied post-pool.
    pooled = jnp.tanh(zmax + b_fc_ref[...])                  # [TB, H] f32

    out_ref[...] = jnp.dot(pooled.astype(jnp.bfloat16), wcls_ref[...],
                           preferred_element_type=jnp.float32) + bcls_ref[...]


def rcnn_forward(x, params):
    """x: [B, L, H] f32.  params in PyTorch layout (see __main__)."""
    B, L, H = x.shape
    R = params['w_hh_f'].shape[1]
    G = 4 * R
    NL = params['w_cls'].shape[0]
    NL_PAD = 128                     # lane-dense classifier output, sliced below

    # ---- Kernel-layout parameter prep (bf16 MXU operands, f32 biases) ---------
    w_in_all = jnp.concatenate(
        [params['w_ih_f'].T,                 # [H, G]
         params['w_ih_b'].T,                 # [H, G]
         params['w_fc'][:, 2 * R:].T],       # [H, H]  (fc_cat columns acting on x)
        axis=1).astype(jnp.bfloat16)         # [H, 2G+H]
    b_gates = jnp.concatenate(
        [params['b_ih_f'] + params['b_hh_f'],
         params['b_ih_b'] + params['b_hh_b']])[None, :].astype(jnp.float32)  # [1, 2G]

    whh_f = params['w_hh_f'].T.astype(jnp.bfloat16)          # [R, G]
    whh_b = params['w_hh_b'].T.astype(jnp.bfloat16)
    wfc_f = params['w_fc'][:, :R].T.astype(jnp.bfloat16)     # [R, H]
    wfc_b = params['w_fc'][:, R:2 * R].T.astype(jnp.bfloat16)
    b_fc = params['b_fc'][None, :].astype(jnp.float32)       # [1, H]

    w_cls = jnp.zeros((H, NL_PAD), jnp.float32).at[:, :NL].set(
        params['w_cls'].T).astype(jnp.bfloat16)              # [H, NL_PAD]
    b_cls = jnp.zeros((1, NL_PAD), jnp.float32).at[0, :NL].set(params['b_cls'])

    x_tm = jnp.transpose(x, (1, 0, 2)).astype(jnp.bfloat16)  # time-major [L, B, H]

    # ---- Batch tiling (sublane-aligned or full) -------------------------------
    TB = 8 if (B % 8 == 0 and B > 8) else B
    assert B % TB == 0
    grid = (B // TB,)

    def _full_spec(shape):
        zeros = (0,) * len(shape)
        return pl.BlockSpec(shape, lambda b, z=zeros: z)

    kernel = functools.partial(_rcnn_kernel, L, R, H)

    out = pl.pallas_call(
        kernel,
        out_shape=jax.ShapeDtypeStruct((B, NL_PAD), jnp.float32),
        grid_spec=pltpu.PrefetchScalarGridSpec(
            num_scalar_prefetch=0,
            grid=grid,
            in_specs=[
                pl.BlockSpec((L, TB, H), lambda b: (0, b, 0)),   # x (time-major)
                _full_spec((H, 2 * G + H)),                      # fused input weights
                _full_spec((1, 2 * G)),                          # gate biases
                _full_spec((R, G)),                              # W_hh fwd
                _full_spec((R, G)),                              # W_hh bwd
                _full_spec((R, H)),                              # fc_cat cols for h_fwd
                _full_spec((R, H)),                              # fc_cat cols for h_bwd
                _full_spec((1, H)),                              # fc_cat bias
                _full_spec((H, NL_PAD)),                         # classifier weight
                _full_spec((1, NL_PAD)),                         # classifier bias
            ],
            out_specs=pl.BlockSpec((TB, NL_PAD), lambda b: (b, 0)),
            scratch_shapes=[
                pltpu.VMEM((L, TB, 2 * G), jnp.float32),         # gate pre-acts
                pltpu.VMEM((L, TB, H), jnp.float32),             # fc_cat partials
            ]),
        compiler_params=pltpu.CompilerParams(
            dimension_semantics=("parallel",),
            vmem_limit_bytes=32 * 1024 * 1024),
    )(x_tm, w_in_all, b_gates, whh_f, whh_b, wfc_f, wfc_b, b_fc, w_cls, b_cls)

    return out[:, :NL]


def rcnn_reference(x, params):
    """Pure-JAX f32 reference mirroring the PyTorch forward exactly."""
    B, L, H = x.shape
    R = params['w_hh_f'].shape[1]

    def lstm_dir(w_ih, w_hh, b_ih, b_hh, reverse):
        order = range(L - 1, -1, -1) if reverse else range(L)
        h = jnp.zeros((B, R), jnp.float32)
        c = jnp.zeros((B, R), jnp.float32)
        outs = [None] * L
        for t in order:
            gates = x[:, t, :] @ w_ih.T + h @ w_hh.T + b_ih + b_hh
            i = jax.nn.sigmoid(gates[:, :R])
            f = jax.nn.sigmoid(gates[:, R:2 * R])
            g = jnp.tanh(gates[:, 2 * R:3 * R])
            o = jax.nn.sigmoid(gates[:, 3 * R:])
            c = f * c + i * g
            h = o * jnp.tanh(c)
            outs[t] = h
        return jnp.stack(outs, axis=1)                        # [B, L, R]

    hf = lstm_dir(params['w_ih_f'], params['w_hh_f'], params['b_ih_f'],
                  params['b_hh_f'], reverse=False)
    hb = lstm_dir(params['w_ih_b'], params['w_hh_b'], params['b_ih_b'],
                  params['b_hh_b'], reverse=True)
    rnn_out = jnp.concatenate([hf, hb], axis=-1)              # [B, L, 2R]
    cat = jnp.concatenate([rnn_out, x], axis=-1)              # [B, L, 2R+H]
    z = jnp.tanh(cat @ params['w_fc'].T + params['b_fc'])     # [B, L, H]
    pooled = jnp.max(z, axis=1)                               # max_pool1d over seq_len
    return pooled @ params['w_cls'].T + params['b_cls']       # [B, NL]


if __name__ == "__main__":
    # Small shapes consistent with the module: sequence_output [B, L, hidden_size],
    # rnn_dim = 32, bidirectional single-layer LSTM, num_labels = 4.
    B, L, H = 16, 16, 32
    R = 32
    NL = 4
    G = 4 * R

    key = jax.random.PRNGKey(0)
    ks = jax.random.split(key, 13)
    s = 0.1

    params = {
        # PyTorch nn.LSTM layout: weight_ih [4R, H], weight_hh [4R, R], biases [4R]
        'w_ih_f': s * jax.random.normal(ks[0], (G, H), jnp.float32),
        'w_hh_f': s * jax.random.normal(ks[1], (G, R), jnp.float32),
        'b_ih_f': s * jax.random.normal(ks[2], (G,), jnp.float32),
        'b_hh_f': s * jax.random.normal(ks[3], (G,), jnp.float32),
        'w_ih_b': s * jax.random.normal(ks[4], (G, H), jnp.float32),
        'w_hh_b': s * jax.random.normal(ks[5], (G, R), jnp.float32),
        'b_ih_b': s * jax.random.normal(ks[6], (G,), jnp.float32),
        'b_hh_b': s * jax.random.normal(ks[7], (G,), jnp.float32),
        # fc_cat: Linear(2R + H, H); classifier: Linear(H, NL)
        'w_fc': s * jax.random.normal(ks[8], (H, 2 * R + H), jnp.float32),
        'b_fc': s * jax.random.normal(ks[9], (H,), jnp.float32),
        'w_cls': s * jax.random.normal(ks[10], (NL, H), jnp.float32),
        'b_cls': s * jax.random.normal(ks[11], (NL,), jnp.float32),
    }
    # TODO(synk): nn.Dropout inside the LSTM is a no-op here (single layer / inference).

    x = jax.random.normal(ks[12], (B, L, H), dtype=jnp.float32)

    out = rcnn_forward(x, params)
    out = jax.block_until_ready(out)

    ref = rcnn_reference(x, params)
    assert out.shape == (B, NL), out.shape
    # bf16 MXU operands with f32 accumulation vs. pure-f32 reference.
    assert jnp.allclose(out, ref, atol=2.5e-2, rtol=2.5e-2), (out, ref)

    print("KERNEL_OK")
</pallas_src>

<mosaic_0001>
module attributes {stable_mosaic.version = 11 : i64} {
  func.func @_rcnn_kernel(%arg0: i32, %arg1: memref<16x8x32xbf16, #tpu.memory_space<vmem>>, %arg2: memref<32x288xbf16, #tpu.memory_space<vmem>>, %arg3: memref<1x256xf32, #tpu.memory_space<vmem>>, %arg4: memref<32x128xbf16, #tpu.memory_space<vmem>>, %arg5: memref<32x128xbf16, #tpu.memory_space<vmem>>, %arg6: memref<32x32xbf16, #tpu.memory_space<vmem>>, %arg7: memref<32x32xbf16, #tpu.memory_space<vmem>>, %arg8: memref<1x32xf32, #tpu.memory_space<vmem>>, %arg9: memref<32x128xbf16, #tpu.memory_space<vmem>>, %arg10: memref<1x128xf32, #tpu.memory_space<vmem>>, %arg11: memref<8x128xf32, #tpu.memory_space<vmem>>, %arg12: memref<16x8x256xf32, #tpu.memory_space<vmem>>, %arg13: memref<16x8x32xf32, #tpu.memory_space<vmem>>) attributes {dimension_semantics = [#tpu.dimension_semantics<parallel>], iteration_bounds = array<i64: 2>, scalar_prefetch = 0 : i64, scratch_operands = 2 : i64, tpu.core_type = #tpu.core_type<tc>, window_params = [{transform_indices = @transform_0, window_bounds = array<i64: 16, 8, 32>}, {pipeline_mode = #tpu.pipeline_mode<synchronous>, transform_indices = @transform_1, window_bounds = array<i64: 32, 288>}, {pipeline_mode = #tpu.pipeline_mode<synchronous>, transform_indices = @transform_2, window_bounds = array<i64: 1, 256>}, {pipeline_mode = #tpu.pipeline_mode<synchronous>, transform_indices = @transform_3, window_bounds = array<i64: 32, 128>}, {pipeline_mode = #tpu.pipeline_mode<synchronous>, transform_indices = @transform_4, window_bounds = array<i64: 32, 128>}, {pipeline_mode = #tpu.pipeline_mode<synchronous>, transform_indices = @transform_5, window_bounds = array<i64: 32, 32>}, {pipeline_mode = #tpu.pipeline_mode<synchronous>, transform_indices = @transform_6, window_bounds = array<i64: 32, 32>}, {pipeline_mode = #tpu.pipeline_mode<synchronous>, transform_indices = @transform_7, window_bounds = array<i64: 1, 32>}, {pipeline_mode = #tpu.pipeline_mode<synchronous>, transform_indices = @transform_8, window_bounds = array<i64: 32, 128>}, {pipeline_mode = #tpu.pipeline_mode<synchronous>, transform_indices = @transform_9, window_bounds = array<i64: 1, 128>}, {transform_indices = @transform_10, window_bounds = array<i64: 8, 128>}]} {
    %c0 = arith.constant 0 : index
    %c0_0 = arith.constant 0 : index
    %c0_1 = arith.constant 0 : index
    %0 = vector.load %arg1[%c0, %c0_0, %c0_1] : memref<16x8x32xbf16, #tpu.memory_space<vmem>>, vector<16x8x32xbf16>
    %c0_2 = arith.constant 0 : index
    %c0_3 = arith.constant 0 : index
    %1 = vector.load %arg2[%c0_2, %c0_3] : memref<32x288xbf16, #tpu.memory_space<vmem>>, vector<32x288xbf16>
    %cst = arith.constant dense<0.000000e+00> : vector<16x8x288xf32>
    %2 = tpu.matmul %0, %1, %cst {dimension_numbers = #tpu.dot_dimension_numbers<[2], [0], [0, 1], [1], [0, 0, 0, 1, 1, 1], [], []>} : vector<16x8x32xbf16>, vector<32x288xbf16>, vector<16x8x288xf32> -> vector<16x8x288xf32>
    %3 = vector.extract_strided_slice %2 {offsets = [0, 0, 0], sizes = [16, 8, 256], strides = [1, 1, 1]} : vector<16x8x288xf32> to vector<16x8x256xf32>
    %c0_4 = arith.constant 0 : index
    %c0_5 = arith.constant 0 : index
    %4 = vector.load %arg3[%c0_4, %c0_5] : memref<1x256xf32, #tpu.memory_space<vmem>>, vector<1x256xf32>
    %5 = vector.shape_cast %4 : vector<1x256xf32> to vector<1x1x256xf32>
    %6 = vector.broadcast %5 : vector<1x1x256xf32> to vector<16x8x256xf32>
    %7 = arith.addf %3, %6 : vector<16x8x256xf32>
    %c0_6 = arith.constant 0 : index
    %c0_7 = arith.constant 0 : index
    %c0_8 = arith.constant 0 : index
    %8 = vector.load %arg12[%c0_6, %c0_7, %c0_8] : memref<16x8x256xf32, #tpu.memory_space<vmem>>, vector<16x8x256xf32>
    tpu.vector_store %arg12[%c0_6, %c0_7, %c0_8], %7 {strides = array<i32>} : memref<16x8x256xf32, #tpu.memory_space<vmem>>, vector<16x8x256xf32>,
    %9 = vector.extract_strided_slice %2 {offsets = [0, 0, 256], sizes = [16, 8, 32], strides = [1, 1, 1]} : vector<16x8x288xf32> to vector<16x8x32xf32>
    %c0_9 = arith.constant 0 : index
    %c0_10 = arith.constant 0 : index
    %c0_11 = arith.constant 0 : index
    %10 = vector.load %arg13[%c0_9, %c0_10, %c0_11] : memref<16x8x32xf32, #tpu.memory_space<vmem>>, vector<16x8x32xf32>
    tpu.vector_store %arg13[%c0_9, %c0_10, %c0_11], %9 {strides = array<i32>} : memref<16x8x32xf32, #tpu.memory_space<vmem>>, vector<16x8x32xf32>,
    %c0_12 = arith.constant 0 : index
    %c0_13 = arith.constant 0 : index
    %11 = vector.load %arg4[%c0_12, %c0_13] : memref<32x128xbf16, #tpu.memory_space<vmem>>, vector<32x128xbf16>
    %c0_14 = arith.constant 0 : index
    %c0_15 = arith.constant 0 : index
    %12 = vector.load %arg5[%c0_14, %c0_15] : memref<32x128xbf16, #tpu.memory_space<vmem>>, vector<32x128xbf16>
    %c0_16 = arith.constant 0 : index
    %c0_17 = arith.constant 0 : index
    %13 = vector.load %arg6[%c0_16, %c0_17] : memref<32x32xbf16, #tpu.memory_space<vmem>>, vector<32x32xbf16>
    %c0_18 = arith.constant 0 : index
    %c0_19 = arith.constant 0 : index
    %14 = vector.load %arg7[%c0_18, %c0_19] : memref<32x32xbf16, #tpu.memory_space<vmem>>, vector<32x32xbf16>
    %cst_20 = arith.constant 0.000000e+00 : f32
    %15 = vector.broadcast %cst_20 : f32 to vector<8x32xf32>
    %cst_21 = arith.constant 0.000000e+00 : f32
    %16 = vector.broadcast %cst_21 : f32 to vector<8x32xf32>
    %c0_i32 = arith.constant 0 : i32
    %c16_i32 = arith.constant 16 : i32
    %17 = arith.addi %c0_i32, %c16_i32 : i32
    %c1_i32 = arith.constant 1 : i32
    %18:2 = scf.for %arg14 = %c0_i32 to %17 step %c1_i32 iter_args(%arg15 = %15, %arg16 = %16) -> (vector<8x32xf32>, vector<8x32xf32>)  : i32 {
      %33 = arith.index_cast %arg14 : i32 to index
      %c0_37 = arith.constant 0 : index
      %c0_38 = arith.constant 0 : index
      %34 = vector.load %arg12[%33, %c0_37, %c0_38] : memref<16x8x256xf32, #tpu.memory_space<vmem>>, vector<1x8x256xf32>
      %35 = vector.shape_cast %34 : vector<1x8x256xf32> to vector<8x256xf32>
      %36 = vector.extract_strided_slice %35 {offsets = [0, 0], sizes = [8, 128], strides = [1, 1]} : vector<8x256xf32> to vector<8x128xf32>
      %37 = arith.truncf %arg15 : vector<8x32xf32> to vector<8x32xbf16>
      %cst_39 = arith.constant dense<0.000000e+00> : vector<8x128xf32>
      %38 = tpu.matmul %37, %11, %cst_39 {dimension_numbers = #tpu.dot_dimension_numbers<[1], [0], [0], [1], [0, 0, 1, 1], [], []>} : vector<8x32xbf16>, vector<32x128xbf16>, vector<8x128xf32> -> vector<8x128xf32>
      %39 = arith.addf %36, %38 : vector<8x128xf32>
      %40 = vector.extract_strided_slice %39 {offsets = [0, 0], sizes = [8, 32], strides = [1, 1]} : vector<8x128xf32> to vector<8x32xf32>
      %41 = arith.negf %40 : vector<8x32xf32>
      %42 = math.exp %41 : vector<8x32xf32>
      %cst_40 = arith.constant 1.000000e+00 : f32
      %43 = vector.broadcast %cst_40 : f32 to vector<8x32xf32>
      %44 = arith.addf %43, %42 : vector<8x32xf32>
      %45 = arith.divf %43, %44 : vector<8x32xf32>
      %46 = vector.extract_strided_slice %39 {offsets = [0, 32], sizes = [8, 32], strides = [1, 1]} : vector<8x128xf32> to vector<8x32xf32>
      %47 = arith.negf %46 : vector<8x32xf32>
      %48 = math.exp %47 : vector<8x32xf32>
      %cst_41 = arith.constant 1.000000e+00 : f32
      %49 = vector.broadcast %cst_41 : f32 to vector<8x32xf32>
      %50 = arith.addf %49, %48 : vector<8x32xf32>
      %51 = arith.divf %49, %50 : vector<8x32xf32>
      %52 = vector.extract_strided_slice %39 {offsets = [0, 64], sizes = [8, 32], strides = [1, 1]} : vector<8x128xf32> to vector<8x32xf32>
      %53 = math.tanh %52 : vector<8x32xf32>
      %54 = vector.extract_strided_slice %39 {offsets = [0, 96], sizes = [8, 32], strides = [1, 1]} : vector<8x128xf32> to vector<8x32xf32>
      %55 = arith.negf %54 : vector<8x32xf32>
      %56 = math.exp %55 : vector<8x32xf32>
      %cst_42 = arith.constant 1.000000e+00 : f32
      %57 = vector.broadcast %cst_42 : f32 to vector<8x32xf32>
      %58 = arith.addf %57, %56 : vector<8x32xf32>
      %59 = arith.divf %57, %58 : vector<8x32xf32>
      %60 = arith.mulf %51, %arg16 : vector<8x32xf32>
      %61 = arith.mulf %45, %53 : vector<8x32xf32>
      %62 = arith.addf %60, %61 : vector<8x32xf32>
      %63 = math.tanh %62 : vector<8x32xf32>
      %64 = arith.mulf %59, %63 : vector<8x32xf32>
      %65 = arith.index_cast %arg14 : i32 to index
      %c0_43 = arith.constant 0 : index
      %c0_44 = arith.constant 0 : index
      %66 = vector.load %arg13[%65, %c0_43, %c0_44] : memref<16x8x32xf32, #tpu.memory_space<vmem>>, vector<1x8x32xf32>
      %67 = vector.shape_cast %66 : vector<1x8x32xf32> to vector<8x32xf32>
      %68 = arith.truncf %64 : vector<8x32xf32> to vector<8x32xbf16>
      %cst_45 = arith.constant dense<0.000000e+00> : vector<8x32xf32>
      %69 = tpu.matmul %68, %13, %cst_45 {dimension_numbers = #tpu.dot_dimension_numbers<[1], [0], [0], [1], [0, 0, 1, 1], [], []>} : vector<8x32xbf16>, vector<32x32xbf16>, vector<8x32xf32> -> vector<8x32xf32>
      %70 = arith.addf %67, %69 : vector<8x32xf32>
      %71 = arith.index_cast %arg14 : i32 to index
      %c0_46 = arith.constant 0 : index
      %c0_47 = arith.constant 0 : index
      %72 = vector.load %arg13[%71, %c0_46, %c0_47] : memref<16x8x32xf32, #tpu.memory_space<vmem>>, vector<1x8x32xf32>
      %73 = vector.shape_cast %72 : vector<1x8x32xf32> to vector<8x32xf32>
      %74 = vector.shape_cast %70 : vector<8x32xf32> to vector<1x8x32xf32>
      tpu.vector_store %arg13[%71, %c0_46, %c0_47], %74 {strides = array<i32>} : memref<16x8x32xf32, #tpu.memory_space<vmem>>, vector<1x8x32xf32>,
      scf.yield %64, %62 : vector<8x32xf32>, vector<8x32xf32>
    }
    %c16_i32_22 = arith.constant 16 : i32
    %cst_23 = arith.constant 0xFF800000 : f32
    %19 = vector.broadcast %cst_23 : f32 to vector<8x32xf32>
    %c0_i32_24 = arith.constant 0 : i32
    %c16_i32_25 = arith.constant 16 : i32
    %20 = arith.addi %c0_i32_24, %c16_i32_25 : i32
    %c1_i32_26 = arith.constant 1 : i32
    %21:3 = scf.for %arg14 = %c0_i32_24 to %20 step %c1_i32_26 iter_args(%arg15 = %15, %arg16 = %16, %arg17 = %19) -> (vector<8x32xf32>, vector<8x32xf32>, vector<8x32xf32>)  : i32 {
      %c15_i32 = arith.constant 15 : i32
      %33 = arith.subi %c15_i32, %arg14 : i32
      %34 = arith.index_cast %33 : i32 to index
      %c0_37 = arith.constant 0 : index
      %c0_38 = arith.constant 0 : index
      %35 = vector.load %arg12[%34, %c0_37, %c0_38] : memref<16x8x256xf32, #tpu.memory_space<vmem>>, vector<1x8x256xf32>
      %36 = vector.shape_cast %35 : vector<1x8x256xf32> to vector<8x256xf32>
      %37 = vector.extract_strided_slice %36 {offsets = [0, 128], sizes = [8, 128], strides = [1, 1]} : vector<8x256xf32> to vector<8x128xf32>
      %38 = arith.truncf %arg15 : vector<8x32xf32> to vector<8x32xbf16>
      %cst_39 = arith.constant dense<0.000000e+00> : vector<8x128xf32>
      %39 = tpu.matmul %38, %12, %cst_39 {dimension_numbers = #tpu.dot_dimension_numbers<[1], [0], [0], [1], [0, 0, 1, 1], [], []>} : vector<8x32xbf16>, vector<32x128xbf16>, vector<8x128xf32> -> vector<8x128xf32>
      %40 = arith.addf %37, %39 : vector<8x128xf32>
      %41 = vector.extract_strided_slice %40 {offsets = [0, 0], sizes = [8, 32], strides = [1, 1]} : vector<8x128xf32> to vector<8x32xf32>
      %42 = arith.negf %41 : vector<8x32xf32>
      %43 = math.exp %42 : vector<8x32xf32>
      %cst_40 = arith.constant 1.000000e+00 : f32
      %44 = vector.broadcast %cst_40 : f32 to vector<8x32xf32>
      %45 = arith.addf %44, %43 : vector<8x32xf32>
      %46 = arith.divf %44, %45 : vector<8x32xf32>
      %47 = vector.extract_strided_slice %40 {offsets = [0, 32], sizes = [8, 32], strides = [1, 1]} : vector<8x128xf32> to vector<8x32xf32>
      %48 = arith.negf %47 : vector<8x32xf32>
      %49 = math.exp %48 : vector<8x32xf32>
      %cst_41 = arith.constant 1.000000e+00 : f32
      %50 = vector.broadcast %cst_41 : f32 to vector<8x32xf32>
      %51 = arith.addf %50, %49 : vector<8x32xf32>
      %52 = arith.divf %50, %51 : vector<8x32xf32>
      %53 = vector.extract_strided_slice %40 {offsets = [0, 64], sizes = [8, 32], strides = [1, 1]} : vector<8x128xf32> to vector<8x32xf32>
      %54 = math.tanh %53 : vector<8x32xf32>
      %55 = vector.extract_strided_slice %40 {offsets = [0, 96], sizes = [8, 32], strides = [1, 1]} : vector<8x128xf32> to vector<8x32xf32>
      %56 = arith.negf %55 : vector<8x32xf32>
      %57 = math.exp %56 : vector<8x32xf32>
      %cst_42 = arith.constant 1.000000e+00 : f32
      %58 = vector.broadcast %cst_42 : f32 to vector<8x32xf32>
      %59 = arith.addf %58, %57 : vector<8x32xf32>
      %60 = arith.divf %58, %59 : vector<8x32xf32>
      %61 = arith.mulf %52, %arg16 : vector<8x32xf32>
      %62 = arith.mulf %46, %54 : vector<8x32xf32>
      %63 = arith.addf %61, %62 : vector<8x32xf32>
      %64 = math.tanh %63 : vector<8x32xf32>
      %65 = arith.mulf %60, %64 : vector<8x32xf32>
      %66 = arith.index_cast %33 : i32 to index
      %c0_43 = arith.constant 0 : index
      %c0_44 = arith.constant 0 : index
      %67 = vector.load %arg13[%66, %c0_43, %c0_44] : memref<16x8x32xf32, #tpu.memory_space<vmem>>, vector<1x8x32xf32>
      %68 = vector.shape_cast %67 : vector<1x8x32xf32> to vector<8x32xf32>
      %69 = arith.truncf %65 : vector<8x32xf32> to vector<8x32xbf16>
      %cst_45 = arith.constant dense<0.000000e+00> : vector<8x32xf32>
      %70 = tpu.matmul %69, %14, %cst_45 {dimension_numbers = #tpu.dot_dimension_numbers<[1], [0], [0], [1], [0, 0, 1, 1], [], []>} : vector<8x32xbf16>, vector<32x32xbf16>, vector<8x32xf32> -> vector<8x32xf32>
      %71 = arith.addf %68, %70 : vector<8x32xf32>
      %72 = arith.maximumf %arg17, %71 : vector<8x32xf32>
      scf.yield %65, %63, %72 : vector<8x32xf32>, vector<8x32xf32>, vector<8x32xf32>
    }
    %c16_i32_27 = arith.constant 16 : i32
    %c0_28 = arith.constant 0 : index
    %c0_29 = arith.constant 0 : index
    %22 = vector.load %arg8[%c0_28, %c0_29] : memref<1x32xf32, #tpu.memory_space<vmem>>, vector<1x32xf32>
    %23 = vector.broadcast %22 : vector<1x32xf32> to vector<8x32xf32>
    %24 = arith.addf %21#2, %23 : vector<8x32xf32>
    %25 = math.tanh %24 : vector<8x32xf32>
    %26 = arith.truncf %25 : vector<8x32xf32> to vector<8x32xbf16>
    %c0_30 = arith.constant 0 : index
    %c0_31 = arith.constant 0 : index
    %27 = vector.load %arg9[%c0_30, %c0_31] : memref<32x128xbf16, #tpu.memory_space<vmem>>, vector<32x128xbf16>
    %cst_32 = arith.constant dense<0.000000e+00> : vector<8x128xf32>
    %28 = tpu.matmul %26, %27, %cst_32 {dimension_numbers = #tpu.dot_dimension_numbers<[1], [0], [0], [1], [0, 0, 1, 1], [], []>} : vector<8x32xbf16>, vector<32x128xbf16>, vector<8x128xf32> -> vector<8x128xf32>
    %c0_33 = arith.constant 0 : index
    %c0_34 = arith.constant 0 : index
    %29 = vector.load %arg10[%c0_33, %c0_34] : memref<1x128xf32, #tpu.memory_space<vmem>>, vector<1x128xf32>
    %30 = vector.broadcast %29 : vector<1x128xf32> to vector<8x128xf32>
    %31 = arith.addf %28, %30 : vector<8x128xf32>
    %c0_35 = arith.constant 0 : index
    %c0_36 = arith.constant 0 : index
    %32 = vector.load %arg11[%c0_35, %c0_36] : memref<8x128xf32, #tpu.memory_space<vmem>>, vector<8x128xf32>
    tpu.vector_store %arg11[%c0_35, %c0_36], %31 {strides = array<i32>} : memref<8x128xf32, #tpu.memory_space<vmem>>, vector<8x128xf32>,
    return
  }
  func.func @transform_0(%arg0: i32) -> (i32, i32, i32) {
    %c0_i32 = arith.constant 0 : i32
    %c0_i32_0 = arith.constant 0 : i32
    %c0_i32_1 = arith.constant 0 : i32
    return %c0_i32, %arg0, %c0_i32_0 : i32, i32, i32
  }
  func.func @transform_1(%arg0: i32) -> (i32, i32) {
    %c0_i32 = arith.constant 0 : i32
    %c0_i32_0 = arith.constant 0 : i32
    %c0_i32_1 = arith.constant 0 : i32
    return %c0_i32, %c0_i32_0 : i32, i32
  }
  func.func @transform_2(%arg0: i32) -> (i32, i32) {
    %c0_i32 = arith.constant 0 : i32
    %c0_i32_0 = arith.constant 0 : i32
    %c0_i32_1 = arith.constant 0 : i32
    return %c0_i32, %c0_i32_0 : i32, i32
  }
  func.func @transform_3(%arg0: i32) -> (i32, i32) {
    %c0_i32 = arith.constant 0 : i32
    %c0_i32_0 = arith.constant 0 : i32
    %c0_i32_1 = arith.constant 0 : i32
    return %c0_i32, %c0_i32_0 : i32, i32
  }
  func.func @transform_4(%arg0: i32) -> (i32, i32) {
    %c0_i32 = arith.constant 0 : i32
    %c0_i32_0 = arith.constant 0 : i32
    %c0_i32_1 = arith.constant 0 : i32
    return %c0_i32, %c0_i32_0 : i32, i32
  }
  func.func @transform_5(%arg0: i32) -> (i32, i32) {
    %c0_i32 = arith.constant 0 : i32
    %c0_i32_0 = arith.constant 0 : i32
    %c0_i32_1 = arith.constant 0 : i32
    return %c0_i32, %c0_i32_0 : i32, i32
  }
  func.func @transform_6(%arg0: i32) -> (i32, i32) {
    %c0_i32 = arith.constant 0 : i32
    %c0_i32_0 = arith.constant 0 : i32
    %c0_i32_1 = arith.constant 0 : i32
    return %c0_i32, %c0_i32_0 : i32, i32
  }
  func.func @transform_7(%arg0: i32) -> (i32, i32) {
    %c0_i32 = arith.constant 0 : i32
    %c0_i32_0 = arith.constant 0 : i32
    %c0_i32_1 = arith.constant 0 : i32
    return %c0_i32, %c0_i32_0 : i32, i32
  }
  func.func @transform_8(%arg0: i32) -> (i32, i32) {
    %c0_i32 = arith.constant 0 : i32
    %c0_i32_0 = arith.constant 0 : i32
    %c0_i32_1 = arith.constant 0 : i32
    return %c0_i32, %c0_i32_0 : i32, i32
  }
  func.func @transform_9(%arg0: i32) -> (i32, i32) {
    %c0_i32 = arith.constant 0 : i32
    %c0_i32_0 = arith.constant 0 : i32
    %c0_i32_1 = arith.constant 0 : i32
    return %c0_i32, %c0_i32_0 : i32, i32
  }
  func.func @transform_10(%arg0: i32) -> (i32, i32) {
    %c0_i32 = arith.constant 0 : i32
    %c0_i32_0 = arith.constant 0 : i32
    return %arg0, %c0_i32 : i32, i32
  }
}

</mosaic_0001>

<bundles_post_ra>
// kernel: tpu_custom_call.1
= control target key start
LH: loop header
LB: loop body
LE: loop exit
PB: predicated region body
PF: predicated region fallthrough
CT: control target
= control target key end

     0   :  { %s2730_s0 = inlined_call_operand.hbm [shape: bf16[16,16,32], index: 0, kind: input, shape index: {}]   ;;  %s2731_s1 = inlined_call_operand.hbm [shape: bf16[32,288], index: 1, kind: input, shape index: {}]   ;;  %s2732_s2 = inlined_call_operand.vmem [shape: f32[1,256], index: 2, kind: input, shape index: {}]   ;;  %s2733_s3 = inlined_call_operand.hbm [shape: bf16[32,128], index: 3, kind: input, shape index: {}]   ;;  %s2734_s4 = inlined_call_operand.hbm [shape: bf16[32,128], index: 4, kind: input, shape index: {}]   ;;  %s2735_s5 = inlined_call_operand.vmem [shape: bf16[32,32], index: 5, kind: input, shape index: {}]   ;;  %s2736_s6 = inlined_call_operand.hbm [shape: bf16[32,32], index: 6, kind: input, shape index: {}]   ;;  %s2737_s7 = inlined_call_operand.vmem [shape: f32[1,32], index: 7, kind: input, shape index: {}]   ;;  %s2738_s8 = inlined_call_operand.hbm [shape: bf16[32,128], index: 8, kind: input, shape index: {}]   ;;  %s2739_s9 = inlined_call_operand.vmem [shape: f32[1,128], index: 9, kind: input, shape index: {}]   ;;  %s2740_s10 = inlined_call_operand.hbm [shape: f32[16,128], index: 10, kind: output, shape index: {}]  }
   0x1   :  { %2747 = sst [smem:[#allocation23_spill]] %s2737_s7 }
   0x2   :  { %2748 = sst [smem:[#allocation24_spill]] %s2739_s9 }
   0x3   :  { %2749 = sst [smem:[#allocation25_spill]] %s2740_s10 }
   0x4   :  { %15 = vsyncpa [#allocation5], 0 }
   0x5   :  { %17 = vsyncpa [#allocation5 + $0x1], 0 }
   0x6   :  { %18 = vsyncpa [#allocation8], 0 }
   0x7   :  { %19 = vsyncpa [#allocation11], 0 }
   0x8   :  { %20 = vsyncpa [#allocation14], 0 }
   0x9   :  { %21 = vsyncpa [#allocation6], 0 }
   0xa   :  { %23 = vsyncpa [#allocation6 + $0x1], 0  ;;  %s2211_s13 = smov 0   ;;  %s2213_s14 = smov 0  }
   0xb   :  { %s2215_s15 = smov 0   ;;  %s2217_s16 = smov 0  }
   0xc LB: > { %2750 = sst [smem:[#allocation21_spill]] %s2091_s13  ;;  %s2232_s17 = sadd.s32 4294967295, %s2103_s16   ;;  %s2103_s16 = sphi %s2217_s16, %s2779_s16   ;;  %s2099_s15 = sphi %s2215_s15, %s2778_s15   ;;  %s2095_s14 = sphi %s2213_s14, %s2777_s14   ;;  %s2091_s13 = sphi %s2211_s13, %s2776_s13  }
   0xd   : > { %s1454_s18 = sadd.s32 4294967294, %s2103_s16   ;;  %p49_p0 = scmp.ne.s32.totalorder %s2095_s14, %s2091_s13 }
   0xe   : > { %p2741_p1 = scmp.eq.s32.totalorder %s2232_s17, 0  ;;  %p268_p3 = scmp.eq.s32.totalorder %s1454_s18, 1 }
   0xf   : > { %p1455_p5 = scmp.ge.s32.totalorder %s2103_s16, 1  ;;  %p275_p7 = scmp.lt.s32.totalorder %s2103_s16, 3 }
  0x10   : > { %p2241_p4 = por %p2741_p1, %p49_p0  ;;  %p2246_p6 = por %p268_p3, %p49_p0 }
  0x11   : > { %p2251_p8 = pnand %p1455_p5, %p275_p7  ;;  %s2133_s22 = smov [#allocation7]  }
  0x12   : > { %s2751_s19 = scalar_select %p2241_p4, 1, 0 }
  0x13   : > { %s2752_s20 = scalar_select %p2246_p6, 1, 0 }
  0x14   : > { %s2754_s21 = scalar_select %p2251_p8, 1, 0 }
  0x15   : > { %2753 = sst [smem:[#allocation22_spill]] %s2752_s20  ;;  %s287_s23 = sshll.u32 %s2133_s22, 4  ;;  %s288_s23 = int_to_ptr.vmem [resolvable:$true] %s287_s23 }
  0x16   : > { %p1646_p9 = pneg %p2251_p8  ;;  %s2134_s25 = smov [#allocation10]  }
  0x17   : > { %s316_s26 = sshll.u32 %s2134_s25, 4  ;;  %s1827_s29 = scalar_lea.hbm %s2731_s1, 768  ;;  %s317_s26 = int_to_ptr.vmem [resolvable:$true] %s316_s26 }
  0x18   : > { %p2260_p11 = pnand %p1646_p9, %p2741_p1  ;;  %p1828_p12 = scmp.ne.s32.totalorder %s2731_s1, %s1827_s29 }
  0x19   : > { %p1834_p5 = scmp.lt.u32.totalorder %s1827_s29, %s2731_s1 }
  0x1a   : > { %p2272_p13 = pneg %p2260_p11 }
  0x1c   : > { %p1830_p0 = pnand %p2272_p13, %p1828_p12 }
  0x1e   : > { %p1831_p3 = pneg %p1830_p0 }
  0x20   : > { %p1836_p7 = pnand %p1834_p5, %p1831_p3 }
  0x22   : > { %1839 = shalt.err (!%p1836_p7)
}
  0x23   : > { %s1840_s25 = scalar_lea.vmem %s288_s23, 768  ;;  %p1848_p2 = scmp.lt.s32.totalorder %s288_s23, %s288_s23 }
  0x24   : > { %p1841_p9 = scmp.ne.s32.totalorder %s288_s23, %s1840_s25  ;;  %p1849_p6 = scmp.lt.s32.totalorder %s1840_s25, %s1840_s25 }
  0x26   : > { %p1843_p10 = pnand %p1841_p9, %p2272_p13  ;;  %p1850_p4 = por %p1849_p6, %p1848_p2 }
  0x28   : > { %p1844_p1 = pneg %p1843_p10 }
  0x2a   : > { %p1851_p8 = pnand %p1850_p4, %p1844_p1 }
  0x2c   : > { %1854 = shalt.err (!%p1851_p8)
}
  0x2d   : > { %s2135_s27 = smov 192   ;;  %s2136_s28 = smov 12  }
  0x2e   : > { %1649 = dma.hbm_to_vmem [thread:$0]  (!%p2260_p11), %s2731_s1, 768, %s288_s23, [#allocation8], %s2135_s27, %s2135_s27, %s2136_s28  }
  0x2f   : > { %s2137_s11 = smov [#allocation9]   ;;  %s1855_s13 = scalar_lea.hbm %s2734_s4, 256 }
  0x30   : > { %s303_s18 = sshll.u32 %s2137_s11, 4  ;;  %p1856_p1 = scmp.ne.s32.totalorder %s2734_s4, %s1855_s13  ;;  %s304_s18 = int_to_ptr.vmem [resolvable:$true] %s303_s18 }
  0x31   : > { %p1862_p6 = scmp.lt.u32.totalorder %s1855_s13, %s2734_s4 }
  0x32   : > { %p1858_p2 = pnand %p1856_p1, %p2272_p13 }
  0x34   : > { %p1859_p4 = pneg %p1858_p2 }
  0x36   : > { %p1864_p8 = pnand %p1862_p6, %p1859_p4 }
  0x38   : > { %1867 = shalt.err (!%p1864_p8)
}
  0x39   : > { %s1868_s23 = scalar_lea.vmem %s317_s26, 256  ;;  %p1876_p3 = scmp.lt.s32.totalorder %s317_s26, %s317_s26 }
  0x3a   : > { %p1869_p10 = scmp.ne.s32.totalorder %s317_s26, %s1868_s23  ;;  %p1877_p5 = scmp.lt.s32.totalorder %s1868_s23, %s1868_s23 }
  0x3c   : > { %p1871_p12 = pnand %p1869_p10, %p2272_p13  ;;  %p1878_p7 = por %p1877_p5, %p1876_p3 }
  0x3e   : > { %p1872_p0 = pneg %p1871_p12 }
  0x40   : > { %p1879_p9 = pnand %p1878_p7, %p1872_p0 }
  0x42   : > { %1882 = shalt.err (!%p1879_p9)
}
  0x43   : > { %s2138_s10 = smov 64   ;;  %s2139_s20 = smov 4  }
  0x44   : > { %1655 = dma.hbm_to_vmem [thread:$0]  (!%p2260_p11), %s2734_s4, 256, %s317_s26, [#allocation11], %s2138_s10, %s2138_s10, %s2139_s20  }
  0x45   : > { %s1883_s28 = scalar_lea.hbm %s2733_s3, 256 }
  0x46   : > { %p1884_p1 = scmp.ne.s32.totalorder %s2733_s3, %s1883_s28  ;;  %p1890_p6 = scmp.lt.u32.totalorder %s1883_s28, %s2733_s3 }
  0x48   : > { %p1886_p2 = pnand %p1884_p1, %p2272_p13 }
  0x4a   : > { %p1887_p4 = pneg %p1886_p2 }
  0x4c   : > { %p1892_p8 = pnand %p1890_p6, %p1887_p4 }
  0x4e   : > { %1895 = shalt.err (!%p1892_p8)
}
  0x4f   : > { %s1896_s25 = scalar_lea.vmem %s304_s18, 256  ;;  %p1904_p3 = scmp.lt.s32.totalorder %s304_s18, %s304_s18 }
  0x50   : > { %p1897_p10 = scmp.ne.s32.totalorder %s304_s18, %s1896_s25  ;;  %p1905_p5 = scmp.lt.s32.totalorder %s1896_s25, %s1896_s25 }
  0x52   : > { %p1899_p12 = pnand %p1897_p10, %p2272_p13  ;;  %p1906_p7 = por %p1905_p5, %p1904_p3 }
  0x54   : > { %p1900_p0 = pneg %p1899_p12 }
  0x56   : > { %p1907_p9 = pnand %p1906_p7, %p1900_p0 }
  0x58   : > { %1910 = shalt.err (!%p1907_p9)
}
  0x59   : > { %1652 = dma.hbm_to_vmem [thread:$0]  (!%p2260_p11), %s2733_s3, 256, %s304_s18, [#allocation8], %s2138_s10, %s2138_s10, %s2139_s20  }
  0x5a   : > { %s2140_s7 = smov [#allocation12]   ;;  %s2141_s13 = smov [#allocation13]  }
  0x5b   : > { %s332_s9 = sshll.u32 %s2140_s7, 4  ;;  %s348_s27 = sshll.u32 %s2141_s13, 4  ;;  %s333_s9 = int_to_ptr.vmem [resolvable:$true] %s332_s9  ;;  %s349_s27 = int_to_ptr.vmem [resolvable:$true] %s348_s27 }
  0x5c   : > { %s1911_s29 = scalar_lea.hbm %s2736_s6, 256 }
  0x5d   : > { %p1912_p1 = scmp.ne.s32.totalorder %s2736_s6, %s1911_s29  ;;  %p1918_p6 = scmp.lt.u32.totalorder %s1911_s29, %s2736_s6 }
  0x5f   : > { %p1914_p2 = pnand %p1912_p1, %p2272_p13 }
  0x61   : > { %p1915_p4 = pneg %p1914_p2 }
  0x63   : > { %p1920_p8 = pnand %p1918_p6, %p1915_p4 }
  0x65   : > { %1923 = shalt.err (!%p1920_p8)
}
  0x66   : > { %s1924_s18 = scalar_lea.vmem %s333_s9, 256  ;;  %p1932_p3 = scmp.lt.s32.totalorder %s333_s9, %s333_s9 }
  0x67   : > { %p1925_p10 = scmp.ne.s32.totalorder %s333_s9, %s1924_s18  ;;  %p1933_p5 = scmp.lt.s32.totalorder %s1924_s18, %s1924_s18 }
  0x69   : > { %p1927_p12 = pnand %p1925_p10, %p2272_p13  ;;  %p1934_p7 = por %p1933_p5, %p1932_p3 }
  0x6b   : > { %p1928_p0 = pneg %p1927_p12 }
  0x6d   : > { %p1935_p9 = pnand %p1934_p7, %p1928_p0 }
  0x6f   : > { %1938 = shalt.err (!%p1935_p9)
}
  0x70   : > { %1658 = dma.hbm_to_vmem [thread:$0]  (!%p2260_p11), %s2736_s6, 256, %s333_s9, [#allocation11], %s2138_s10, %s2138_s10, %s2139_s20  }
  0x71   : > { %s1939_s30 = scalar_lea.hbm %s2738_s8, 256 }
  0x72   : > { %p1940_p1 = scmp.ne.s32.totalorder %s2738_s8, %s1939_s30  ;;  %p1946_p6 = scmp.lt.u32.totalorder %s1939_s30, %s2738_s8 }
  0x74   : > { %p1942_p2 = pnand %p1940_p1, %p2272_p13 }
  0x76   : > { %p1943_p4 = pneg %p1942_p2 }
  0x78   : > { %p1948_p8 = pnand %p1946_p6, %p1943_p4 }
  0x7a   : > { %1951 = shalt.err (!%p1948_p8)
}
  0x7b   : > { %s1952_s26 = scalar_lea.vmem %s349_s27, 256  ;;  %p1960_p3 = scmp.lt.s32.totalorder %s349_s27, %s349_s27 }
  0x7c   : > { %p1953_p10 = scmp.ne.s32.totalorder %s349_s27, %s1952_s26  ;;  %p1961_p5 = scmp.lt.s32.totalorder %s1952_s26, %s1952_s26 }
  0x7e   : > { %p1955_p12 = pnand %p1953_p10, %p2272_p13  ;;  %p1962_p7 = por %p1961_p5, %p1960_p3 }
  0x80   : > { %p1956_p0 = pneg %p1955_p12 }
  0x82   : > { %p1963_p9 = pnand %p1962_p7, %p1956_p0 }
  0x84   : > { %1966 = shalt.err (!%p1963_p9)
}
  0x85   : > { %1661 = dma.hbm_to_vmem [thread:$0]  (!%p2260_p11), %s2738_s8, 256, %s349_s27, [#allocation14], %s2138_s10, %s2138_s10, %s2139_s20  }
  0x86   : > { %s2373_s12 = sadd.s32 1, %s2103_s16   ;;  %s36_s23 = sadd.s32 1, %s2099_s15 }
  0x87   : > { %s33_s24 = ssub.s32 %s2103_s16, %s2373_s12  ;;  %p43_p1 = scmp.ne.s32.totalorder %s2099_s15, %s2095_s14 }
  0x88   : > { %p34_p13 = scmp.eq.s32.totalorder %s33_s24, 0  ;;  %p44_p2 = scmp.eq.s32.totalorder %s2103_s16, 0 }
  0x89   : > { %p1675_p4 = scmp.lt.s32.totalorder %s2103_s16, 2  ;;  %p2757_p8 = scmp.eq.s32.totalorder %s2232_s17, 1 }
  0x8a   : > { %s2383_s7 = scalar_select %p34_p13, %s2099_s15, %s36_s23  }
  0x8b   : > { %p45_p6 = por %p44_p2, %p43_p1  ;;  %p2387_p10 = por %p2757_p8, %p43_p1 }
  0x8c   : > { %s365_s28 = sand.u32 1, %s2099_s15   ;;  %s1463_s30 = sshll.u32 %s2103_s16, 6 }
  0x8d   : > { %s1462_s27 = sshll.u32 %s365_s28, 6  ;;  %s2396_s22 = scalar_lea.hbm %s2730_s0, %s1463_s30 }
  0x8e   : > { %s369_s25 = scalar_lea.vmem [#allocation4], %s1462_s27  ;;  %p2398_p11 = pnand %p1675_p4, %p45_p6 }
  0x8f   : > { %s375_s26 = sshll.u32 %s369_s25, 4  ;;  %s2404_s18 = scalar_lea.sflag [#allocation5], %s365_s28  ;;  %s2402_s26 = int_to_ptr.vmem [resolvable:$true] %s375_s26 }
  0x90   : > { %s1967_s24 = scalar_lea.hbm %s2396_s22, 1024  ;;  %p1969_p0 = pneg %p2398_p11 }
  0x91   : > { %p1968_p12 = scmp.ne.s32.totalorder %s2396_s22, %s1967_s24  ;;  %s1972_s27 = scalar_lea.hbm %s2730_s0, 2048 }
  0x92   : > { %p1973_p7 = scmp.lt.u32.totalorder %s2396_s22, %s2730_s0  ;;  %p1974_p9 = scmp.lt.u32.totalorder %s1972_s27, %s1967_s24 }
  0x93   : > { %p1970_p3 = pnand %p1969_p0, %p1968_p12  ;;  %p1976_p1 = scmp.lt.u32.totalorder %s1967_s24, %s2396_s22 }
  0x94   : > { %p1975_p13 = por %p1974_p9, %p1973_p7 }
  0x95   : > { %p1971_p5 = pneg %p1970_p3 }
  0x96   : > { %p1977_p2 = por %p1976_p1, %p1975_p13 }
  0x98   : > { %p1978_p4 = pnand %p1977_p2, %p1971_p5 }
  0x9a   : > { %1981 = shalt.err (!%p1978_p4)
}
  0x9b   : > { %s1982_s28 = scalar_lea.vmem %s2402_s26, 1024  ;;  %s2142_s25 = smov [#allocation4]  }
  0x9c   : > { %p1983_p6 = scmp.ne.s32.totalorder %s2402_s26, %s1982_s28  ;;  %s1987_s23 = sshll.u32 %s2142_s25, 4  ;;  %s1988_s23 = int_to_ptr.vmem [resolvable:$false] %s1987_s23 }
  0x9d   : > { %s1989_s30 = scalar_lea.vmem %s1988_s23, 2048  ;;  %p1990_p3 = scmp.lt.s32.totalorder %s2402_s26, %s1988_s23 }
  0x9e   : > { %p1985_p8 = pnand %p1983_p6, %p1969_p0  ;;  %p1991_p7 = scmp.lt.s32.totalorder %s1989_s30, %s1982_s28 }
  0xa0   : > { %p1986_p12 = pneg %p1985_p8  ;;  %p1992_p9 = por %p1991_p7, %p1990_p3 }
  0xa2   : > { %p1993_p13 = pnand %p1992_p9, %p1986_p12 }
  0xa4   : > { %1996 = shalt.err (!%p1993_p13)
}
  0xa5   : > { %s2143_s24 = smov 128   ;;  %p2760_p0 = scmp.ne.s32.totalorder %s2754_s21, 0 }
  0xa6   : > { %1665 = dma.hbm_to_vmem [thread:$0]  (!%p2398_p11), %s2396_s22, 1024, %s2402_s26, %s2404_s18, %s2143_s24, %s2138_s10, %s2139_s20  }
  0xa7   : > { %387 = sbr.rel (%p2760_p0) target bundleno = 2778 (0xada), region = 60  ;;  %s2437_s27 = sand.u32 (!%p2760_p0), 1, %s2095_s14  }
  0xa8   : > { %s1465_s29 = sshll.u32 (!%p2760_p0), %s2437_s27, 6  ;;  %s390_s11 = scalar_lea.sflag (!%p2760_p0), [#allocation5], %s2437_s27 }
  0xa9   : > { %s2441_s28 = scalar_lea.vmem (!%p2760_p0), [#allocation4], %s1465_s29  ;;  %p2761_p5 = scmp.ne.s32.totalorder (!%p2760_p0), %s2751_s19, 0 }
  0xae   : > { %2070 = dma.done.wait (%p2761_p5), %s390_s11, 1024  }
  0xaf   : > { %2072 = vsyncadd (%p2761_p5), %s390_s11, 4294966272  ;;  %p2762_p11 = scmp.eq.s32.totalorder %s2232_s17, 0 }
  0xb1   : > { %2074 = dma.done.wait (%p2762_p11), [#allocation8], 1024   ;;  %p2763_p1 = pmov %p2762_p11 }
  0xb3   : > { %2076 = vsyncadd (%p2763_p1), [#allocation8], 4294966272  ;;  %p2764_p2 = pmov %p2763_p1 }
  0xb4   : > { %p2765_p4 = pmov %p2763_p1 }
  0xb5   : > { %2078 = dma.done.wait (%p2764_p2), [#allocation11], 512  }
  0xb6   : > { %2080 = vsyncadd (%p2765_p4), [#allocation11], 4294966784  ;;  %p2766_p6 = pmov %p2763_p1 }
  0xb7   : > { %p2767_p8 = pmov %p2763_p1 }
  0xb8   : > { %2082 = dma.done.wait (%p2766_p6), [#allocation14], 256  }
  0xb9   : > { %2084 = vsyncadd (%p2767_p8), [#allocation14], 4294967040  ;;  %s1471_s19 = sshll.u32 %s2437_s27, 3  ;;  %v2144_v0 = vmov 0   ;;  %v2462_v1 = vld [vmem:[#allocation9] sm:$0xf]  ;;  %v784_v31 = vlaneseq }
  0xba   : > { %604 = vmatprep.mubr.bf16.mxu0 %v2144_v0  ;;  %664 = vmatprep.mubr.bf16.mxu1 %v2144_v0  ;;  %v2464_v2 = vld [vmem:[#allocation9 + $0x4] sm:$0xf]  ;;  %v2466_v3 = vld [vmem:[#allocation9 + $0x8] sm:$0xf]  ;;  %v2468_v4 = vld [vmem:[#allocation9 + $0xc] sm:$0xf] }
  0xbb   : > { %v2470_v5 = vld [vmem:[#allocation10] sm:$0xf]  ;;  %v2472_v6 = vld [vmem:[#allocation10 + $0x4] sm:$0xf]  ;;  %v2474_v7 = vld [vmem:[#allocation10 + $0x8] sm:$0xf] }
  0xbc   : > { %v2476_v8 = vld [vmem:[#allocation10 + $0xc] sm:$0xf]  ;;  %v2481_v9 = vld [vmem:[%s2735_s5] sm:$0xf]  ;;  %v2486_v10 = vld [vmem:[%s2735_s5 + $0x4] sm:$0xf] }
  0xbd   : > { %v2491_v11 = vld [vmem:[%s2735_s5 + $0x8] sm:$0xf]  ;;  %v2496_v12 = vld [vmem:[%s2735_s5 + $0xc] sm:$0xf]  ;;  %v2498_v13 = vld [vmem:[#allocation12] sm:$0xf] }
  0xbe   : > { %v2500_v14 = vld [vmem:[#allocation12 + $0x4] sm:$0xf]  ;;  %v2502_v15 = vld [vmem:[#allocation12 + $0x8] sm:$0xf]  ;;  %v2504_v16 = vld [vmem:[#allocation12 + $0xc] sm:$0xf] }
  0xbf   : > { %v1791_v17 = vld [vmem:[#allocation7 + $0x4] ss:$12 sps:$4 sm:$0xff]   ;;  %v1793_v18 = vld [vmem:[#allocation7] ss:$12 sps:$4 sm:$0xff]   ;;  %v1794_v19 = vld [vmem:[#allocation7 + $0x1c] ss:$12 sps:$4 sm:$0xff]  }
  0xc0   : > { %572 = vmatprep.subr.bf16.mxu0 %v1791_v17  ;;  %1618 = vmatprep.subr.bf16.mxu1 %v1791_v17  ;;  %v1796_v20 = vld [vmem:[#allocation7 + $0x18] ss:$12 sps:$4 sm:$0xff]   ;;  %v1799_v21 = vld [vmem:[#allocation7 + $0x8] ss:$12 sps:$4 sm:$0xff]   ;;  %vm547_vm0 = vcmask 261120   ;;  %v785_v32 = vshrl.u32 %v784_v31, 7 }
  0xc1   : > { %573 = vmatpush1.bf16.msra.mxu0 %v1793_v18  ;;  %1620 = vmatpush1.bf16.msra.mxu1 %v1793_v18  ;;  %v1797_v22 = vld [vmem:[%s2441_s28] sm:$0xff]   ;;  %v1798_v23 = vld [vmem:[%s2441_s28 + $0x30] sm:$0xff]   ;;  %v1800_v25 = vld [vmem:[%s2441_s28 + $0x8] sm:$0xff]   ;;  %s2593_s24 = scalar_lea.vmem [#allocation15], %s1471_s19  ;;  %s2599_s29 = smov 0  }
  0xc2   : > { %574 = vmatprep.subr.bf16.mxu0 %v1794_v19  ;;  %1619 = vmatprep.subr.bf16.mxu1 %v1794_v19  ;;  %v1802_v24 = vld [vmem:[#allocation7 + $0x20] ss:$12 sps:$4 sm:$0xff]   ;;  %v1801_v26 = vld [vmem:[%s2441_s28 + $0x38] sm:$0xff]   ;;  %v1803_v27 = vld [vmem:[%s2441_s28 + $0x10] sm:$0xff]   ;;  %v786_v33 = vsub.s32 0, %v785_v32  ;;  %v790_v35 = vsub.s32 1, %v785_v32 }
  0xc3   : > { %v1804_v28 = vld [vmem:[%s2441_s28 + $0x18] sm:$0xff]   ;;  %v1805_v29 = vld [vmem:[%s2441_s28 + $0x20] sm:$0xff]   ;;  %v1806_v30 = vld [vmem:[%s2441_s28 + $0x28] sm:$0xff]  }
  0xc4   : > { %v782_v34 = vld [vmem:[%s2732_s2] sm:$0x3] }
  0xc5   : > { %575 = vmatpush1.bf16.msra.mxu0 %v1796_v20  ;;  %1621 = vmatpush1.bf16.msra.mxu1 %v1796_v20  ;;  %v2539_v36 = vrot.slane %v782_v34, %v786_v33  ;;  %v2541_v37 = vrot.slane %v782_v34, %v790_v35 }
  0xc6   : > { %1558 = vmatprep.subr.bf16.mxu1 %v1799_v21 }
  0xc8   : > { %1486 = vmatmul.mubr.msk.bf16.vlgmr.msra.gmra.mrb[0].mxu0 %vm547_vm0, %v1797_v22  ;;  %1492 = vmatmul.mubr.msk.bf16.vlgmr.msra.gmra.mrb[0].mxu1 %vm547_vm0, %v1798_v23 }
  0xc9   : > { %1559 = vmatpush3.bf16.msra.mxu1 %v1799_v21  ;;  %614 = vmatprep.mubr.bf16.mxu0 %v2144_v0 }
  0xca   : > { %674 = vmatprep.mubr.bf16.mxu1 %v2144_v0  ;;  %1560 = vmatprep.subr.bf16.mxu1 %v1802_v24 }
  0xcd   : > { %1561 = vmatpush3.bf16.msra.mxu1 %v1802_v24 }
  0xd0   : > { %1487 = vmatmul.mubr.msk.bf16.gmra.mrb[4].mxu0 %vm547_vm0, %v1800_v25  ;;  %1493 = vmatmul.mubr.msk.bf16.gmra.mrb[4].mxu1 %vm547_vm0, %v1801_v26 }
  0xd1   : > { %624 = vmatprep.mubr.bf16.mxu0 %v2144_v0  ;;  %1562 = vmatprep.mubr.msk.bf16.mxu1 %vm547_vm0, %v1797_v22 }
  0xd8   : > { %1488 = vmatmul.mubr.msk.bf16.gmra.mrb[8].mxu0 %vm547_vm0, %v1803_v27  ;;  %1563 = vmatmul.mubr.msk.bf16.vlgmr.msra.gmra.mrb[8].mxu1 %vm547_vm0, %v1800_v25 }
  0xd9   : > { %634 = vmatprep.mubr.bf16.mxu0 %v2144_v0  ;;  %1566 = vmatprep.mubr.msk.bf16.mxu1 %vm547_vm0, %v1803_v27 }
  0xe0   : > { %1489 = vmatmul.mubr.msk.bf16.gmra.mrb[12].mxu0 %vm547_vm0, %v1804_v28  ;;  %1567 = vmatmul.mubr.msk.bf16.gmra.mrb[12].mxu1 %vm547_vm0, %v1804_v28 }
  0xe1   : > { %644 = vmatprep.mubr.bf16.mxu0 %v2144_v0  ;;  %1570 = vmatprep.mubr.msk.bf16.mxu1 %vm547_vm0, %v1805_v29 }
  0xe8   : > { %1490 = vmatmul.mubr.msk.bf16.gmra.mrb[16].mxu0 %vm547_vm0, %v1805_v29  ;;  %1571 = vmatmul.mubr.msk.bf16.gmra.mrb[16].mxu1 %vm547_vm0, %v1806_v30 }
  0xe9   : > { %654 = vmatprep.mubr.bf16.mxu0 %v2144_v0  ;;  %1574 = vmatprep.mubr.msk.bf16.mxu1 %vm547_vm0, %v1798_v23 }
  0xf0   : > { %1491 = vmatmul.mubr.msk.bf16.gmra.mrb[20].mxu0 %vm547_vm0, %v1806_v30  ;;  %1575 = vmatmul.mubr.msk.bf16.gmra.mrb[20].mxu1 %vm547_vm0, %v1801_v26 }
 0x19b   : > { %v606_v38 = vpop.f32.mrb[0].mxu0  ;;  %v666_v39 = vpop.f32.mrb[0].mxu1 }
 0x19c   : > { %v794_v40 = vadd.f32 %v2539_v36, %v606_v38  ;;  %v818_v41 = vadd.f32 %v2539_v36, %v666_v39  ;;  %v608_v42 = vpop.f32.mrb[1].mxu0  ;;  %v668_v43 = vpop.f32.mrb[1].mxu1 }
 0x19d   : > { %v795_v44 = vadd.f32 %v2541_v37, %v608_v42  ;;  %v819_v45 = vadd.f32 %v2541_v37, %v668_v43  ;;  %v610_v46 = vpop.f32.mrb[2].mxu0  ;;  %v670_v47 = vpop.f32.mrb[2].mxu1 }
 0x19e   : > { %826 = vst [vmem:[#allocation2] sm:$0xff] %v794_v40  ;;  %850 = vst [vmem:[#allocation2 + $0xc0] sm:$0xff] %v818_v41  ;;  %v796_v48 = vadd.f32 %v2539_v36, %v610_v46  ;;  %v820_v49 = vadd.f32 %v2539_v36, %v670_v47  ;;  %v612_v50 = vpop.f32.mrb[3].mxu0  ;;  %v672_v51 = vpop.f32.mrb[3].mxu1 }
 0x19f   : > { %827 = vst [vmem:[#allocation2 + $0x8] sm:$0xff] %v795_v44  ;;  %851 = vst [vmem:[#allocation2 + $0xc8] sm:$0xff] %v819_v45  ;;  %v797_v52 = vadd.f32 %v2541_v37, %v612_v50  ;;  %v821_v53 = vadd.f32 %v2541_v37, %v672_v51 }
 0x1a0   : > { %828 = vst [vmem:[#allocation2 + $0x10] sm:$0xff] %v796_v48  ;;  %852 = vst [vmem:[#allocation2 + $0xd0] sm:$0xff] %v820_v49 }
 0x1a1   : > { %829 = vst [vmem:[#allocation2 + $0x18] sm:$0xff] %v797_v52  ;;  %853 = vst [vmem:[#allocation2 + $0xd8] sm:$0xff] %v821_v53 }
 0x1a3   : > { %v616_v54 = vpop.f32.mrb[4].mxu0  ;;  %v676_v55 = vpop.f32.mrb[4].mxu1 }
 0x1a4   : > { %v798_v56 = vadd.f32 %v2539_v36, %v616_v54  ;;  %v822_v57 = vadd.f32 %v2539_v36, %v676_v55  ;;  %v618_v58 = vpop.f32.mrb[5].mxu0  ;;  %v678_v59 = vpop.f32.mrb[5].mxu1 }
 0x1a5   : > { %v799_v60 = vadd.f32 %v2541_v37, %v618_v58  ;;  %v823_v61 = vadd.f32 %v2541_v37, %v678_v59  ;;  %v620_v62 = vpop.f32.mrb[6].mxu0  ;;  %v680_v63 = vpop.f32.mrb[6].mxu1 }
 0x1a6   : > { %830 = vst [vmem:[#allocation2 + $0x20] sm:$0xff] %v798_v56  ;;  %854 = vst [vmem:[#allocation2 + $0xe0] sm:$0xff] %v822_v57  ;;  %v800_v0 = vadd.f32 %v2539_v36, %v620_v62  ;;  %v824_v17 = vadd.f32 %v2539_v36, %v680_v63  ;;  %v622_v18 = vpop.f32.mrb[7].mxu0  ;;  %v682_v19 = vpop.f32.mrb[7].mxu1 }
 0x1a7   : > { %831 = vst [vmem:[#allocation2 + $0x28] sm:$0xff] %v799_v60  ;;  %855 = vst [vmem:[#allocation2 + $0xe8] sm:$0xff] %v823_v61  ;;  %v801_v20 = vadd.f32 %v2541_v37, %v622_v18  ;;  %v825_v21 = vadd.f32 %v2541_v37, %v682_v19 }
 0x1a8   : > { %832 = vst [vmem:[#allocation2 + $0x30] sm:$0xff] %v800_v0  ;;  %856 = vst [vmem:[#allocation2 + $0xf0] sm:$0xff] %v824_v17 }
 0x1a9   : > { %833 = vst [vmem:[#allocation2 + $0x38] sm:$0xff] %v801_v20  ;;  %857 = vst [vmem:[#allocation2 + $0xf8] sm:$0xff] %v825_v21 }
 0x1ab   : > { %v626_v22 = vpop.f32.mrb[8].mxu0  ;;  %v1564_v23 = vpop.f32.mrb[8].mxu1 }
 0x1ac   : > { %v802_v24 = vadd.f32 %v2539_v36, %v626_v22  ;;  %860 = vst.msk [vmem:[#allocation3 + $0x10] sm:$0xff] %vm547_vm0, %v1564_v23  ;;  %v628_v25 = vpop.f32.mrb[9].mxu0  ;;  %v719_v26 = vpop.f32.mrb[9].mxu1 }
 0x1ad   : > { %v803_v27 = vadd.f32 %v2541_v37, %v628_v25  ;;  %858 = vst.msk [vmem:[#allocation3] sm:$0xff] %vm547_vm0, %v719_v26  ;;  %v630_v28 = vpop.f32.mrb[10].mxu0  ;;  %v1565_v29 = vpop.f32.mrb[10].mxu1  ;;  %v2597_v25 = vmov 0.0  }
 0x1ae   : > { %834 = vst [vmem:[#allocation2 + $0x40] sm:$0xff] %v802_v24  ;;  %v804_v30 = vadd.f32 %v2539_v36, %v630_v28  ;;  %861 = vst.msk [vmem:[#allocation3 + $0x18] sm:$0xff] %vm547_vm0, %v1565_v29  ;;  %v632_v31 = vpop.f32.mrb[11].mxu0  ;;  %v722_v32 = vpop.f32.mrb[11].mxu1  ;;  %v2595_v24 = vmov 0.0  }
 0x1af   : > { %835 = vst [vmem:[#allocation2 + $0x48] sm:$0xff] %v803_v27  ;;  %v805_v33 = vadd.f32 %v2541_v37, %v632_v31  ;;  %859 = vst.msk [vmem:[#allocation3 + $0x8] sm:$0xff] %vm547_vm0, %v722_v32 }
 0x1b0   : > { %836 = vst [vmem:[#allocation2 + $0x50] sm:$0xff] %v804_v30 }
 0x1b1   : > { %837 = vst [vmem:[#allocation2 + $0x58] sm:$0xff] %v805_v33 }
 0x1b3   : > { %v636_v34 = vpop.f32.mrb[12].mxu0  ;;  %v1568_v35 = vpop.f32.mrb[12].mxu1 }
 0x1b4   : > { %v806_v38 = vadd.f32 %v2539_v36, %v636_v34  ;;  %864 = vst.msk [vmem:[#allocation3 + $0x30] sm:$0xff] %vm547_vm0, %v1568_v35  ;;  %v638_v39 = vpop.f32.mrb[13].mxu0  ;;  %v735_v40 = vpop.f32.mrb[13].mxu1 }
 0x1b5   : > { %v807_v41 = vadd.f32 %v2541_v37, %v638_v39  ;;  %862 = vst.msk [vmem:[#allocation3 + $0x20] sm:$0xff] %vm547_vm0, %v735_v40  ;;  %v640_v42 = vpop.f32.mrb[14].mxu0  ;;  %v1569_v43 = vpop.f32.mrb[14].mxu1 }
 0x1b6   : > { %838 = vst [vmem:[#allocation2 + $0x60] sm:$0xff] %v806_v38  ;;  %v808_v44 = vadd.f32 %v2539_v36, %v640_v42  ;;  %865 = vst.msk [vmem:[#allocation3 + $0x38] sm:$0xff] %vm547_vm0, %v1569_v43  ;;  %v642_v45 = vpop.f32.mrb[15].mxu0  ;;  %v738_v46 = vpop.f32.mrb[15].mxu1 }
 0x1b7   : > { %839 = vst [vmem:[#allocation2 + $0x68] sm:$0xff] %v807_v41  ;;  %v809_v47 = vadd.f32 %v2541_v37, %v642_v45  ;;  %863 = vst.msk [vmem:[#allocation3 + $0x28] sm:$0xff] %vm547_vm0, %v738_v46 }
 0x1b8   : > { %840 = vst [vmem:[#allocation2 + $0x70] sm:$0xff] %v808_v44 }
 0x1b9   : > { %841 = vst [vmem:[#allocation2 + $0x78] sm:$0xff] %v809_v47 }
 0x1bb   : > { %v646_v48 = vpop.f32.mrb[16].mxu0  ;;  %v1572_v49 = vpop.f32.mrb[16].mxu1 }
 0x1bc   : > { %v810_v50 = vadd.f32 %v2539_v36, %v646_v48  ;;  %868 = vst.msk [vmem:[#allocation3 + $0x50] sm:$0xff] %vm547_vm0, %v1572_v49  ;;  %v648_v51 = vpop.f32.mrb[17].mxu0  ;;  %v751_v52 = vpop.f32.mrb[17].mxu1 }
 0x1bd   : > { %v811_v53 = vadd.f32 %v2541_v37, %v648_v51  ;;  %866 = vst.msk [vmem:[#allocation3 + $0x40] sm:$0xff] %vm547_vm0, %v751_v52  ;;  %v650_v54 = vpop.f32.mrb[18].mxu0  ;;  %v1573_v55 = vpop.f32.mrb[18].mxu1 }
 0x1be   : > { %842 = vst [vmem:[#allocation2 + $0x80] sm:$0xff] %v810_v50  ;;  %v812_v56 = vadd.f32 %v2539_v36, %v650_v54  ;;  %869 = vst.msk [vmem:[#allocation3 + $0x58] sm:$0xff] %vm547_vm0, %v1573_v55  ;;  %v652_v57 = vpop.f32.mrb[19].mxu0  ;;  %v754_v58 = vpop.f32.mrb[19].mxu1 }
 0x1bf   : > { %843 = vst [vmem:[#allocation2 + $0x88] sm:$0xff] %v811_v53  ;;  %v813_v59 = vadd.f32 %v2541_v37, %v652_v57  ;;  %867 = vst.msk [vmem:[#allocation3 + $0x48] sm:$0xff] %vm547_vm0, %v754_v58 }
 0x1c0   : > { %844 = vst [vmem:[#allocation2 + $0x90] sm:$0xff] %v812_v56 }
 0x1c1   : > { %845 = vst [vmem:[#allocation2 + $0x98] sm:$0xff] %v813_v59 }
 0x1c3   : > { %v656_v60 = vpop.f32.mrb[20].mxu0  ;;  %v1576_v61 = vpop.f32.mrb[20].mxu1 }
 0x1c4   : > { %v814_v62 = vadd.f32 %v2539_v36, %v656_v60  ;;  %872 = vst.msk [vmem:[#allocation3 + $0x70] sm:$0xff] %vm547_vm0, %v1576_v61  ;;  %v658_v63 = vpop.f32.mrb[21].mxu0  ;;  %v767_v0 = vpop.f32.mrb[21].mxu1 }
 0x1c5   : > { %v815_v17 = vadd.f32 %v2541_v37, %v658_v63  ;;  %870 = vst.msk [vmem:[#allocation3 + $0x60] sm:$0xff] %vm547_vm0, %v767_v0  ;;  %v660_v18 = vpop.f32.mrb[22].mxu0  ;;  %v1577_v19 = vpop.f32.mrb[22].mxu1 }
 0x1c6   : > { %846 = vst [vmem:[#allocation2 + $0xa0] sm:$0xff] %v814_v62  ;;  %v816_v20 = vadd.f32 %v2539_v36, %v660_v18  ;;  %873 = vst.msk [vmem:[#allocation3 + $0x78] sm:$0xff] %vm547_vm0, %v1577_v19  ;;  %v662_v21 = vpop.f32.mrb[23].mxu0  ;;  %v770_v22 = vpop.f32.mrb[23].mxu1 }
 0x1c7   : > { %847 = vst [vmem:[#allocation2 + $0xa8] sm:$0xff] %v815_v17  ;;  %v817_v23 = vadd.f32 %v2541_v37, %v662_v21  ;;  %871 = vst.msk [vmem:[#allocation3 + $0x68] sm:$0xff] %vm547_vm0, %v770_v22 }
 0x1c8   : > { %848 = vst [vmem:[#allocation2 + $0xb0] sm:$0xff] %v816_v20 }
 0x1c9   : > { %849 = vst [vmem:[#allocation2 + $0xb8] sm:$0xff] %v817_v23 }
 0x1ca LB: >> { %v1504_v36 = vcombine.low %v2462_v1, %v2464_v2  ;;  %v2145_v37 = vmov 0.0   ;;  %v902_v26 = vpack.c.bf16 %v2111_v25, %v2111_v25  ;;  %v1505_v27 = vcombine.low %v2466_v3, %v2468_v4  ;;  %s2147_s11 = smov 32   ;;  %s1531_s28 = sshll.u32 %s2115_s29, 4  ;;  %s2115_s29 = sphi %s2599_s29, %s895_s29   ;;  %v2111_v25 = vphi %v2597_v25, %v985_v25   ;;  %v2107_v24 = vphi %v2595_v24, %v979_v24  }
 0x1cb   : >> { %1578 = vmatprep.subr.bf16.mxu0 %v2145_v37  ;;  %1586 = vmatprep.subr.bf16.mxu1 %v2145_v37  ;;  %vm2146_vm1 = vmmov 0   ;;  %s900_s19 = scalar_lea.vmem [#allocation2], %s1531_s28  ;;  %s2148_s21 = smov 64   ;;  %v1509_v46 = vcombine.low %v2481_v9, %v2486_v10  ;;  %v1510_v47 = vcombine.low %v2491_v11, %v2496_v12 }
 0x1cc   : >> { %1579 = vmatpush3.bf16.msra.mxu0 %v1504_v36  ;;  %1582 = vmatprep.mubr.msk.bf16.mxu0 %vm2146_vm1, %v2145_v37  ;;  %s1508_s10 = sshll.u32 %s2115_s29, 3  ;;  %s895_s29 = sadd.s32 1, %s2115_s29  }
 0x1cd   : >> { %1580 = vmatprep.subr.bf16.mxu0 %v2145_v37  ;;  %1590 = vmatprep.mubr.msk.bf16.mxu1 %vm2146_vm1, %v2145_v37  ;;  %s987_s20 = scalar_lea.vmem [#allocation3], %s1508_s10  ;;  %p892_p12 = scmp.ge.s32.totalorder %s895_s29, 16  }
 0x1ce   : >> { %904 = vrot.lane.b32.xlu0 %v902_v26, %s2147_s11  ;;  %1587 = vmatpush3.bf16.msra.mxu1 %v1509_v46  ;;  %v988_v52 = vld [vmem:[%s987_s20] sm:$0xff]  ;;  %v2629_v58 = vmov (%p892_p12), -inf   ;;  %v2631_v59 = vmov (%p892_p12), 0.0   ;;  %v2633_v60 = vmov (%p892_p12), 0.0   ;;  %s2635_s22 = smov (%p892_p12), 0  }
 0x1cf   : >> { %1588 = vmatprep.subr.bf16.mxu1 %v2145_v37 }
 0x1d0   : >> { %1581 = vmatpush3.bf16.msra.mxu0 %v1505_v27  ;;  %v901_v29 = vld [vmem:[%s900_s19] sm:$0xff] }
 0x1d2   : >> { %1589 = vmatpush3.bf16.msra.mxu1 %v1510_v47 }
 0x240   : >> { %v905_v28 = vpop.permute.xlu0 %904 }
 0x241   : >> { %1583 = vmatmul.mubr.msk.bf16.vlgmr.msra.gmra.mrb[0].mxu0 %vm547_vm0, %v905_v28 }
 0x314   : >> { %v955_v30 = vpop.f32.mrb[0].mxu0 }
 0x315   : >> { %v961_v31 = vadd.f32 %v955_v30, %v901_v29  ;;  %v1584_v32 = vpop.f32.mrb[1].mxu0 }
 0x316   : >> { %v958_v33 = vpop.f32.mrb[2].mxu0 }
 0x317   : >> { %1807 = vtanh.f32 %v961_v31  ;;  %v1585_v34 = vpop.f32.mrb[3].mxu0  ;;  %v1507_v38 = vmul.f32 -1.442695, %v961_v31 }
 0x319   : >> { %1809 = vpow2.f32 %v1507_v38 }
 0x321   : >> { %v1808_v35 = vpop.eup %1807 }
 0x322   : >> { %971 = vrot.lane.b32.xlu0 %v1808_v35, %s2148_s21 }
 0x323   : >> { %v1810_v39 = vpop.eup %1809 }
 0x324   : >> { %v965_v40 = vadd.f32 1.0, %v1810_v39 }
 0x326   : >> { %1811 = vrcp.f32 %v965_v40 }
 0x330   : >> { %v1812_v41 = vpop.eup %1811 }
 0x331   : >> { %v969_v44 = vmul.f32 %v2107_v24, %v1812_v41 }
 0x394   : >> { %v972_v42 = vpop.permute.xlu0 %971 }
 0x395   : >> { %v974_v43 = vmul.f32 %v1812_v41, %v972_v42 }
 0x397   : >> { %976 = vrot.lane.b32.xlu1 %v974_v43, %s2147_s11 }
 0x409   : >> { %v977_v45 = vpop.permute.xlu1 %976 }
 0x40a   : >> { %v979_v24 = vadd.f32 %v977_v45, %v969_v44  }
 0x40c   : >> { %1813 = vtanh.f32 %v979_v24 }
 0x416   : >> { %v1814_v48 = vpop.eup %1813 }
 0x417   : >> { %982 = vrot.lane.b32.xlu1 %v1814_v48, %s2148_s21 }
 0x489   : >> { %v983_v49 = vpop.permute.xlu1 %982 }
 0x48a   : >> { %v985_v25 = vmul.f32 %v1812_v41, %v983_v49  }
 0x48c   : >> { %v989_v50 = vpack.c.bf16 %v985_v25, %v985_v25 }
 0x48e   : >> { %991 = vrot.lane.b32.xlu0 %v989_v50, %s2147_s11 }
 0x500   : >> { %v992_v51 = vpop.permute.xlu0 %991 }
 0x501   : >> { %1591 = vmatmul.mubr.msk.bf16.vlgmr.msra.gmra.mrb[0].mxu1 %vm547_vm0, %v992_v51 }
 0x5d1   : > { %894 = sbr.rel (!%p892_p12) target bundleno = 458 (0x1ca), region = 143 }
 0x5d4   : >> { %v1042_v53 = vpop.f32.mrb[0].mxu1 }
 0x5d5   : >> { %v1048_v54 = vadd.f32 %v1042_v53, %v988_v52  ;;  %v1592_v55 = vpop.f32.mrb[1].mxu1 }
 0x5d6   : >> { %v1045_v56 = vpop.f32.mrb[2].mxu1 }
 0x5d7   : >> { %1049 = vst.msk [vmem:[%s987_s20] sm:$0xff] %vm547_vm0, %v1048_v54  ;;  %v1593_v57 = vpop.f32.mrb[3].mxu1 }
 0x5d8 LB: >> { %v1514_v1 = vcombine.low %v2470_v5, %v2472_v6  ;;  %v2149_v2 = vmov 0.0   ;;  %v1064_v3 = vpack.c.bf16 %v2127_v60, %v2127_v60  ;;  %v1515_v4 = vcombine.low %v2474_v7, %v2476_v8  ;;  %s2151_s26 = smov 32   ;;  %s1059_s9 = ssub.s32 15, %s2131_s22  ;;  %s2131_s22 = sphi %s2635_s22, %s1055_s22   ;;  %v2127_v60 = vphi %v2633_v60, %v1147_v60   ;;  %v2123_v59 = vphi %v2631_v59, %v1141_v59   ;;  %v2119_v58 = vphi %v2629_v58, %v2768_v58  }
 0x5d9   : >> { %1594 = vmatprep.subr.bf16.mxu0 %v2149_v2  ;;  %1602 = vmatprep.subr.bf16.mxu1 %v2149_v2  ;;  %vm2150_vm2 = vmmov 0   ;;  %s1532_s18 = sshll.u32 %s1059_s9, 4  ;;  %s2152_s23 = smov 64   ;;  %v1519_v25 = vcombine.low %v2498_v13, %v2500_v14  ;;  %v1520_v36 = vcombine.low %v2502_v15, %v2504_v16 }
 0x5da   : >> { %1595 = vmatpush3.bf16.msra.mxu0 %v1514_v1  ;;  %1598 = vmatprep.mubr.msk.bf16.mxu0 %vm2150_vm2, %v2149_v2  ;;  %s1062_s25 = scalar_lea.vmem [#allocation2], %s1532_s18  ;;  %s1518_s30 = sshll.u32 %s1059_s9, 3 }
 0x5db   : >> { %1596 = vmatprep.subr.bf16.mxu0 %v2149_v2  ;;  %1606 = vmatprep.mubr.msk.bf16.mxu1 %vm2150_vm2, %v2149_v2  ;;  %v1063_v10 = vld [vmem:[%s1062_s25 + $0x8] sm:$0xff]  ;;  %s1149_s29 = scalar_lea.vmem [#allocation3], %s1518_s30  ;;  %s1055_s22 = sadd.s32 1, %s2131_s22  }
 0x5dc   : >> { %1066 = vrot.lane.b32.xlu0 %v1064_v3, %s2151_s26  ;;  %1603 = vmatpush3.bf16.msra.mxu1 %v1519_v25  ;;  %p1052_p3 = scmp.ge.s32.totalorder %s1055_s22, 16  }
 0x5dd   : >> { %1604 = vmatprep.subr.bf16.mxu1 %v2149_v2  ;;  %v1823_v38 = vld [vmem:[#allocation13] sm:$0xff] (%p1052_p3)   ;;  %v2153_v39 = vmov (%p1052_p3), 0.0   ;;  %v1824_v40 = vld [vmem:[#allocation13 + $0x8] sm:$0xff] (%p1052_p3)   ;;  %vm2154_vm3 = vmmov (%p1052_p3), 0   ;;  %s2769_s19 = sld [smem:[#allocation23_spill]] (%p1052_p3)  ;;  %s2770_s20 = sld [smem:[#allocation24_spill]] (%p1052_p3) }
 0x5de   : >> { %1597 = vmatpush3.bf16.msra.mxu0 %v1515_v4  ;;  %v1150_v29 = vld [vmem:[%s1149_s29] sm:$0xff]  ;;  %s1528_s22 = sshll.u32 (%p1052_p3), %s2232_s17, 7  ;;  %s2771_s25 = sld [smem:[#allocation25_spill]] (%p1052_p3) }
 0x5df   : > { %1610 = vmatprep.subr.bf16.mxu0 (%p1052_p3), %v2153_v39  ;;  %s1290_s30 = scalar_lea.sflag (%p1052_p3), [#allocation6], %s2437_s27  ;;  %s2155_s17 = smov (%p1052_p3), [#allocation15]  }
 0x5e0   : >> { %1605 = vmatpush3.bf16.msra.mxu1 %v1520_v36  ;;  %s2001_s11 = sshll.u32 (%p1052_p3), %s2155_s17, 4  ;;  %s2002_s11 = int_to_ptr.vmem [resolvable:$false] %s2001_s11 }
 0x5e1   : > { %s2003_s28 = scalar_lea.vmem (%p1052_p3), %s2002_s11, 256 }
 0x5e3   : > { %v1522_v41 = vld [vmem:[%s2769_s19] ss:$0 sm:$0xff] (%p1052_p3) }
 0x5e4   : > { %v1523_v6 = vld [vmem:[%s2770_s20] ss:$0 sm:$0xff] (%p1052_p3) }
 0x64e   : >> { %v1067_v9 = vpop.permute.xlu0 %1066 }
 0x64f   : >> { %1599 = vmatmul.mubr.msk.bf16.vlgmr.msra.gmra.mrb[0].mxu0 %vm547_vm0, %v1067_v9 }
 0x650   : > { %1611 = vmatpush3.bf16.msra.mxu0 (%p1052_p3), %v1823_v38  ;;  %1614 = vmatprep.mubr.msk.bf16.mxu0 (%p1052_p3), %vm2154_vm3, %v2153_v39 }
 0x651   : > { %1612 = vmatprep.subr.bf16.mxu0 (%p1052_p3), %v2153_v39 }
 0x654   : > { %1613 = vmatpush3.bf16.msra.mxu0 (%p1052_p3), %v1824_v40 }
 0x722   : >> { %v1117_v11 = vpop.f32.mrb[0].mxu0 }
 0x723   : >> { %v1123_v12 = vadd.f32 %v1117_v11, %v1063_v10  ;;  %v1600_v61 = vpop.f32.mrb[1].mxu0 }
 0x724   : >> { %v1120_v62 = vpop.f32.mrb[2].mxu0 }
 0x725   : >> { %1815 = vtanh.f32 %v1123_v12  ;;  %v1601_v63 = vpop.f32.mrb[3].mxu0  ;;  %v1517_v17 = vmul.f32 -1.442695, %v1123_v12 }
 0x727   : >> { %1817 = vpow2.f32 %v1517_v17 }
 0x72f   : >> { %v1816_v0 = vpop.eup %1815 }
 0x730   : >> { %1133 = vrot.lane.b32.xlu0 %v1816_v0, %s2152_s23 }
 0x731   : >> { %v1818_v18 = vpop.eup %1817 }
 0x732   : >> { %v1127_v19 = vadd.f32 1.0, %v1818_v18 }
 0x734   : >> { %1819 = vrcp.f32 %v1127_v19 }
 0x73e   : >> { %v1820_v20 = vpop.eup %1819 }
 0x73f   : >> { %v1131_v23 = vmul.f32 %v2123_v59, %v1820_v20 }
 0x7a2   : >> { %v1134_v21 = vpop.permute.xlu0 %1133 }
 0x7a3   : >> { %v1136_v22 = vmul.f32 %v1820_v20, %v1134_v21 }
 0x7a5   : >> { %1138 = vrot.lane.b32.xlu1 %v1136_v22, %s2151_s26 }
 0x817   : >> { %v1139_v24 = vpop.permute.xlu1 %1138 }
 0x818   : >> { %v1141_v59 = vadd.f32 %v1139_v24, %v1131_v23  }
 0x81a   : >> { %1821 = vtanh.f32 %v1141_v59 }
 0x824   : >> { %v1822_v37 = vpop.eup %1821 }
 0x825   : >> { %1144 = vrot.lane.b32.xlu1 %v1822_v37, %s2152_s23  ;;  %s2685_s23 = scalar_lea.hbm (%p1052_p3), %s2771_s25, %s1528_s22 }
 0x897   : >> { %v1145_v26 = vpop.permute.xlu1 %1144 }
 0x898   : >> { %v1147_v60 = vmul.f32 %v1820_v20, %v1145_v26  }
 0x89a   : >> { %v1151_v27 = vpack.c.bf16 %v1147_v60, %v1147_v60 }
 0x89c   : >> { %1153 = vrot.lane.b32.xlu0 %v1151_v27, %s2151_s26  ;;  %s1303_s26 = sshll.u32 (%p1052_p3), %s2593_s24, 4  ;;  %s2687_s26 = int_to_ptr.vmem [resolvable:$true] %s1303_s26 }
 0x89d   : > { %s1997_s29 = scalar_lea.vmem (%p1052_p3), %s2687_s26, 128  ;;  %p2004_p0 = scmp.lt.s32.totalorder (%p1052_p3), %s2687_s26, %s2002_s11 }
 0x89e   : > { %p1998_p7 = scmp.ne.s32.totalorder (%p1052_p3), %s2687_s26, %s1997_s29  ;;  %p2005_p5 = scmp.lt.s32.totalorder (%p1052_p3), %s2003_s28, %s1997_s29 }
 0x8a0   : > { %p1999_p9 = pnand (%p1052_p3), %p1998_p7, %p2387_p10  ;;  %p2006_p11 = por (%p1052_p3), %p2005_p5, %p2004_p0 }
 0x8a2   : > { %p2000_p13 = pneg (%p1052_p3), %p1999_p9 }
 0x8a4   : > { %p2007_p1 = pnand (%p1052_p3), %p2006_p11, %p2000_p13 }
 0x90e   : >> { %v1154_v28 = vpop.permute.xlu0 %1153 }
 0x90f   : >> { %1607 = vmatmul.mubr.msk.bf16.vlgmr.msra.gmra.mrb[0].mxu1 %vm547_vm0, %v1154_v28 }
 0x9e1   : > { %1054 = sbr.rel (!%p1052_p3) target bundleno = 1496 (0x5d8), region = 154 }
 0x9e2   : >> { %v1204_v30 = vpop.f32.mrb[0].mxu1 }
 0x9e3   : >> { %v1210_v31 = vadd.f32 %v1204_v30, %v1150_v29  ;;  %v1608_v32 = vpop.f32.mrb[1].mxu1 }
 0x9e4   : >> { %v1207_v33 = vpop.f32.mrb[2].mxu1 }
 0x9e5   : >> { %v1211_v34 = vmax.f32 %v2119_v58, %v1210_v31   ;;  %v1609_v35 = vpop.f32.mrb[3].mxu1 }
 0x9e7   : >> { %v2768_v58 = vmov %v1211_v34  ;;  %v1219_v42 = vadd.f32 (%p1052_p3), %v1522_v41, %v1211_v34 }
 0x9e9   : > { %1825 = vtanh.f32 %v1219_v42 }
 0x9f3   : > { %v1826_v43 = vpop.eup %1825 }
 0x9f4   : > { %v1221_v5 = vpack.c.bf16 %v1826_v43, %v1826_v43 }
 0x9f6   : > { %1615 = vmatmul.mubr.msk.bf16.vlgmr.msra.gmra.mrb[0].mxu0 %vm547_vm0, %v1221_v5 }
 0xac9   : > { %v1282_v7 = vpop.f32.mrb[0].mxu0 }
 0xaca   : > { %v1283_v8 = vadd.f32 %v1523_v6, %v1282_v7  ;;  %v1616_v13 = vpop.f32.mrb[1].mxu0 }
 0xacb   : > { %v1285_v14 = vpop.f32.mrb[2].mxu0 }
 0xacc   : > { %1288 = vst [vmem:[%s2593_s24] sm:$0xff] %v1283_v8  ;;  %v1617_v15 = vpop.f32.mrb[3].mxu0 }
 0xacd   : > { %2010 = shalt.err (!%p2007_p1)
}
 0xace   : > { %s2011_s27 = scalar_lea.hbm %s2685_s23, 128  ;;  %s2015_s21 = scalar_lea.hbm %s2771_s25, 256 }
 0xacf   : > { %p2012_p2 = scmp.ne.s32.totalorder %s2685_s23, %s2011_s27  ;;  %p2016_p8 = scmp.lt.u32.totalorder %s2685_s23, %s2771_s25 }
 0xad0   : > { %p2017_p12 = scmp.lt.u32.totalorder %s2015_s21, %s2011_s27  ;;  %p2019_p7 = scmp.lt.u32.totalorder %s2011_s27, %s2685_s23 }
 0xad1   : > { %p2013_p4 = pnand %p2012_p2, %p2387_p10 }
 0xad2   : > { %p2018_p3 = por %p2017_p12, %p2016_p8 }
 0xad3   : > { %p2014_p6 = pneg %p2013_p4 }
 0xad4   : > { %p2020_p9 = por %p2019_p7, %p2018_p3 }
 0xad6   : > { %p2021_p13 = pnand %p2020_p9, %p2014_p6 }
 0xad8   : > { %2024 = shalt.err (!%p2021_p13)
}
 0xad9   : > { %1644 = dma.vmem_to_hbm [thread:$0]  (%p2387_p10), %s2687_s26, 128, %s2685_s23, %s1290_s30  }
 0xada PF: > { %s2772_s22 = sld [smem:[#allocation21_spill]]  ;;  %s2773_s9 = sld [smem:[#allocation22_spill]] }
 0xadb   : > { %p2775_p5 = scmp.ge.s32.totalorder %s2103_s16, 2 }
 0xae0   : > { %s1315_s18 = sand.u32 1, %s2772_s22   ;;  %p2774_p0 = scmp.ne.s32.totalorder %s2773_s9, 0 }
 0xae1   : > { %s1316_s29 = scalar_lea.sflag [#allocation6], %s1315_s18 }
 0xae2   : > { %p1667_p11 = pnand %p2775_p5, %p2774_p0 }
 0xae4   : > { %2086 = dma.done.wait (!%p1667_p11), %s1316_s29, 128  }
 0xae5   : > { %2088 = vsyncadd (!%p1667_p11), %s1316_s29, 4294967168  ;;  %p26_p1 = scmp.ge.s32.totalorder %s2373_s12, 4   ;;  %s2776_s13 = smov %s2095_s14 }
 0xae6   : > { %s2777_s14 = smov %s2099_s15  ;;  %s2778_s15 = smov %s2383_s7 }
 0xae7   : > { %s2779_s16 = smov %s2373_s12  ;;  %28 = sbr.rel (!%p26_p1) target bundleno = 12 (0xc), region = 165 }
 0xaee   :  { %1321 = vsyncpa [#allocation5], 1 }
 0xaef   :  { %1323 = vsyncpa [#allocation5 + $0x1], 1 }
 0xaf0   :  { %1324 = vsyncpa [#allocation8], 1 }
 0xaf1   :  { %1325 = vsyncpa [#allocation11], 1 }
 0xaf2   :  { %1326 = vsyncpa [#allocation14], 1 }
 0xaf3   :  { %1327 = vsyncpa [#allocation6], 1 }
 0xaf4   :  { %1329 = vsyncpa [#allocation6 + $0x1], 1 }

</bundles_post_ra>
